<compile_context>
chip_gen: v5e
topology: v5e:2x2
jax: 0.10.0
libtpu: 0.0.40
codegen_flags: <defaults>
</compile_context>

<pallas_src>
import jax
import jax.numpy as jnp
from jax.experimental import pallas as pl
from jax.experimental.pallas import tpu as pltpu


def _make_kernel(*, H, W, stride, mxu_dtype):
    L = H * W
    # 3x3 taps, row-major over (ty, tx); flat lane offset of the source pixel.
    taps = [((ty - 1) * W + (tx - 1), ty - 1, tx - 1)
            for ty in range(3) for tx in range(3)]

    def kernel(x_ref, coords_ref, dw_ref, b1_ref, pw_ref, b2_ref, *rest):
        if stride == 1:
            keep_ref = None
            (o_ref,) = rest
        else:
            keep_ref, o_ref = rest

        x = x_ref[0].astype(jnp.float32)          # (C', L)  spatial on lanes
        dw = dw_ref[...]                          # (C', 9)  BN1 scale folded in

        # 4 base validity masks from the (row, col) index vectors.  Together
        # with the lane rotations below this reproduces the padding=1 zero
        # halo: the roll-wrap sources are exactly the invalid ones.
        row = coords_ref[0:1, :]                  # (1, L) int32
        col = coords_ref[1:2, :]
        row_ok = {-1: row >= 1, 0: None, 1: row < (H - 1)}
        col_ok = {-1: col >= 1, 0: None, 1: col < (W - 1)}

        # 3x3 depthwise conv: 8 static lane rotations (XLU slot, co-issues
        # with the VPU) + masked multiply-accumulates (VPU), f32 accumulation.
        acc = dw[:, 4:5] * x                      # centre tap, always valid
        for k, (off, dy, dx) in enumerate(taps):
            if off == 0:
                continue
            src = pltpu.roll(x, shift=(-off) % L, axis=1)
            m = row_ok[dy]
            if col_ok[dx] is not None:
                m = col_ok[dx] if m is None else jnp.logical_and(m, col_ok[dx])
            acc = acc + dw[:, k:k + 1] * jnp.where(m, src, 0.0)

        if keep_ref is not None:
            # Strided subsample as a 0/1 selection matmul whose operand is
            # built in-kernel (sel[l, m] = (l == keep_idx[m])): exact in bf16,
            # no (L, Lo) HBM/VMEM operand, single MXU pass.
            # TODO(synk): still quadratic in image area -- for large images
            # use the row-tiled (C, H, W) layout where stride is a plain slice.
            lo = keep_ref.shape[-1]
            lane = jax.lax.broadcasted_iota(jnp.int32, (L, lo), 0)
            sel = (lane == keep_ref[...]).astype(mxu_dtype)
            acc = jnp.dot(acc.astype(mxu_dtype), sel,
                          preferred_element_type=jnp.float32)    # (C', Lo)

        # BN1 bias (scale already folded into dw) + ReLU.
        h = jnp.maximum(acc + b1_ref[...], 0.0)                   # (C', Lo)

        # 1x1 pointwise conv on the MXU (block-diagonal over packed images;
        # BN2 scale folded into the weight) + bias + ReLU.
        y = jnp.dot(pw_ref[...], h.astype(mxu_dtype),
                    preferred_element_type=jnp.float32)           # (Cout', Lo)
        y = jnp.maximum(y + b2_ref[...], 0.0)
        o_ref[0] = y.astype(o_ref.dtype)

    return kernel


def mobilenet_block(x_nchw, dw_w, pw_w, bn1, bn2, *, stride=1, eps=1e-5,
                    mxu_dtype=jnp.bfloat16, out_dtype=jnp.float32,
                    images_per_step=None):
    """Forward of the PyTorch Block (eval-mode BN).

    x_nchw : (N, C, H, W) float32
    dw_w   : (C, 1, 3, 3)    depthwise conv weight (groups=C)
    pw_w   : (Cout, C, 1, 1) pointwise conv weight
    bn1/bn2: dicts with 'gamma', 'beta', 'mean', 'var' vectors
    returns (N, Cout, Ho, Wo) in out_dtype (default f32).
    """
    N, C, H, W = x_nchw.shape
    Cout = pw_w.shape[0]
    Ho = (H + 2 - 3) // stride + 1
    Wo = (W + 2 - 3) // stride + 1
    L, Lo = H * W, Ho * Wo

    # ---- images-per-step packing (free reshapes only, no transposes) ----
    if images_per_step is None:
        nb = min(N, max(1, 8 // max(C, 1), -(-128 // max(Lo, 1))))
    else:
        nb = min(N, max(1, images_per_step))
    while N % nb:
        nb -= 1
    G = N // nb
    Cp, Coutp = nb * C, nb * Cout

    x = x_nchw.reshape(G, Cp, L).astype(jnp.float32)   # NCHW, channels of nb
                                                       # images stacked on sublanes

    # ---- fold eval-mode BN into the conv weights (tiny, wrapper-side) ----
    def fold(bn, n):
        s = (bn["gamma"] / jnp.sqrt(bn["var"] + eps)).astype(jnp.float32)
        b = (bn["beta"] - bn["mean"] * s).astype(jnp.float32)
        return s, b.reshape(n, 1)

    s1, b1 = fold(bn1, C)
    s2, b2 = fold(bn2, Cout)
    dw = dw_w.reshape(C, 9).astype(jnp.float32) * s1[:, None]        # (C, 9)
    pw = pw_w.reshape(Cout, C).astype(jnp.float32) * s2[:, None]     # (Cout, C)

    dw_t = jnp.tile(dw, (nb, 1))                                     # (C', 9)
    b1_t = jnp.tile(b1, (nb, 1))                                     # (C', 1)
    pw_bd = jnp.kron(jnp.eye(nb, dtype=jnp.float32), pw).astype(mxu_dtype)
    b2_t = jnp.tile(b2, (nb, 1))                                     # (Cout', 1)

    # (row, col) index per flattened lane: the "two small validity vectors".
    rr, cc = jnp.meshgrid(jnp.arange(H, dtype=jnp.int32),
                          jnp.arange(W, dtype=jnp.int32), indexing="ij")
    coords = jnp.stack([rr.reshape(-1), cc.reshape(-1)], axis=0)     # (2, L)

    inputs = [x, coords, dw_t, b1_t, pw_bd, b2_t]
    in_specs = [
        pl.BlockSpec((1, Cp, L), lambda g: (g, 0, 0)),
        pl.BlockSpec((2, L), lambda g: (0, 0)),
        pl.BlockSpec((Cp, 9), lambda g: (0, 0)),
        pl.BlockSpec((Cp, 1), lambda g: (0, 0)),
        pl.BlockSpec((Coutp, Cp), lambda g: (0, 0)),
        pl.BlockSpec((Coutp, 1), lambda g: (0, 0)),
    ]
    if stride != 1:
        # Flat source index of every strided output position (tiny int32).
        keep = (jnp.arange(Ho, dtype=jnp.int32)[:, None] * (stride * W)
                + jnp.arange(Wo, dtype=jnp.int32)[None, :] * stride
                ).reshape(1, Lo)
        inputs.append(keep)
        in_specs.append(pl.BlockSpec((1, Lo), lambda g: (0, 0)))

    kernel = _make_kernel(H=H, W=W, stride=stride, mxu_dtype=mxu_dtype)

    mxu_bytes = jnp.dtype(mxu_dtype).itemsize
    out_bytes = jnp.dtype(out_dtype).itemsize
    flops = (N * C * (2 * 9 * L + (2 * L * Lo if stride != 1 else 0))
             + N * 2 * Cout * C * Lo)
    bytes_accessed = (N * C * L * 4 + N * Cout * Lo * out_bytes
                      + int(dw_t.size) * 4 + int(b1_t.size) * 4
                      + int(b2_t.size) * 4 + int(pw_bd.size) * mxu_bytes
                      + int(coords.size) * 4
                      + (Lo * 4 if stride != 1 else 0))

    out = pl.pallas_call(
        kernel,
        out_shape=jax.ShapeDtypeStruct((G, Coutp, Lo), out_dtype),
        grid_spec=pltpu.PrefetchScalarGridSpec(
            num_scalar_prefetch=0,
            grid=(G,),
            in_specs=in_specs,
            out_specs=pl.BlockSpec((1, Coutp, Lo), lambda g: (g, 0, 0)),
        ),
        compiler_params=pltpu.CompilerParams(
            dimension_semantics=("parallel",)),
        cost_estimate=pl.CostEstimate(
            flops=int(flops), transcendentals=0,
            bytes_accessed=int(bytes_accessed)),
    )(*inputs)

    # Free reshapes only: (G, nb*Cout, Lo) is already (N, Cout, Ho, Wo) order.
    return out.reshape(N, Cout, Ho, Wo)


def _reference(x, dw_w, pw_w, bn1, bn2, stride=1, eps=1e-5):
    """Pure-JAX reference matching the PyTorch forward (eval-mode BN)."""
    C = x.shape[1]

    def bn_relu(y, bn):
        s = bn["gamma"] / jnp.sqrt(bn["var"] + eps)
        b = bn["beta"] - bn["mean"] * s
        return jnp.maximum(y * s[None, :, None, None] + b[None, :, None, None], 0.0)

    y = jax.lax.conv_general_dilated(
        x, dw_w, window_strides=(stride, stride), padding=((1, 1), (1, 1)),
        dimension_numbers=("NCHW", "OIHW", "NCHW"), feature_group_count=C)
    y = bn_relu(y, bn1)
    y = jax.lax.conv_general_dilated(
        y, pw_w, window_strides=(1, 1), padding="VALID",
        dimension_numbers=("NCHW", "OIHW", "NCHW"))
    return bn_relu(y, bn2)


if __name__ == "__main__":
    # Small shapes consistent with the module: batch=2, in_planes=4,
    # out_planes=8, spatial=16.
    N, C, Cout, H, W = 2, 4, 8, 16, 16

    key = jax.random.PRNGKey(0)
    kx, kdw, kpw, kg1, kb1, km1, kv1, kg2, kb2, km2, kv2 = jax.random.split(key, 11)

    x = jax.random.normal(kx, (N, C, H, W), jnp.float32)
    dw_w = jax.random.normal(kdw, (C, 1, 3, 3), jnp.float32) * 0.3
    pw_w = jax.random.normal(kpw, (Cout, C, 1, 1), jnp.float32) * 0.3
    bn1 = dict(gamma=1.0 + 0.1 * jax.random.normal(kg1, (C,), jnp.float32),
               beta=0.1 * jax.random.normal(kb1, (C,), jnp.float32),
               mean=0.1 * jax.random.normal(km1, (C,), jnp.float32),
               var=1.0 + 0.1 * jax.random.uniform(kv1, (C,), jnp.float32))
    bn2 = dict(gamma=1.0 + 0.1 * jax.random.normal(kg2, (Cout,), jnp.float32),
               beta=0.1 * jax.random.normal(kb2, (Cout,), jnp.float32),
               mean=0.1 * jax.random.normal(km2, (Cout,), jnp.float32),
               var=1.0 + 0.1 * jax.random.uniform(kv2, (Cout,), jnp.float32))

    # 1) exact-f32 MXU path, stride=1: tight check vs. f32 reference.
    out = jax.block_until_ready(
        mobilenet_block(x, dw_w, pw_w, bn1, bn2, stride=1, mxu_dtype=jnp.float32))
    ref = jax.block_until_ready(_reference(x, dw_w, pw_w, bn1, bn2, stride=1))
    assert out.shape == ref.shape, (out.shape, ref.shape)
    assert jnp.allclose(out, ref, rtol=1e-4, atol=1e-4), \
        float(jnp.max(jnp.abs(out - ref)))

    # 2) default bf16-MXU path (perf config), stride=1: looser tolerance.
    out_bf = jax.block_until_ready(
        mobilenet_block(x, dw_w, pw_w, bn1, bn2, stride=1))
    assert jnp.allclose(out_bf, ref, rtol=2e-2, atol=2e-2), \
        float(jnp.max(jnp.abs(out_bf - ref)))

    # 3) stride=2, exact-f32 MXU (in-kernel selection, f32): tight check.
    out_s2 = jax.block_until_ready(
        mobilenet_block(x, dw_w, pw_w, bn1, bn2, stride=2, mxu_dtype=jnp.float32))
    ref_s2 = jax.block_until_ready(_reference(x, dw_w, pw_w, bn1, bn2, stride=2))
    assert out_s2.shape == ref_s2.shape, (out_s2.shape, ref_s2.shape)
    assert jnp.allclose(out_s2, ref_s2, rtol=1e-4, atol=1e-4), \
        float(jnp.max(jnp.abs(out_s2 - ref_s2)))

    # 4) stride=2, default bf16-MXU path (perf config).
    out_s2_bf = jax.block_until_ready(
        mobilenet_block(x, dw_w, pw_w, bn1, bn2, stride=2))
    assert jnp.allclose(out_s2_bf, ref_s2, rtol=2e-2, atol=2e-2), \
        float(jnp.max(jnp.abs(out_s2_bf - ref_s2)))

    # 5) bf16 output slab (halves HBM writeback when the consumer tolerates it).
    out_o16 = jax.block_until_ready(
        mobilenet_block(x, dw_w, pw_w, bn1, bn2, stride=1,
                        out_dtype=jnp.bfloat16))
    assert out_o16.dtype == jnp.bfloat16
    assert jnp.allclose(out_o16.astype(jnp.float32), ref, rtol=5e-2, atol=5e-2), \
        float(jnp.max(jnp.abs(out_o16.astype(jnp.float32) - ref)))

    print("KERNEL_OK")
</pallas_src>

<mosaic_0001>
module attributes {stable_mosaic.version = 11 : i64} {
  func.func @kernel(%arg0: i32, %arg1: memref<1x8x256xf32, #tpu.memory_space<vmem>>, %arg2: memref<2x256xi32, #tpu.memory_space<vmem>>, %arg3: memref<8x9xf32, #tpu.memory_space<vmem>>, %arg4: memref<8x1xf32, #tpu.memory_space<vmem>>, %arg5: memref<16x8xf32, #tpu.memory_space<vmem>>, %arg6: memref<16x1xf32, #tpu.memory_space<vmem>>, %arg7: memref<1x16x256xf32, #tpu.memory_space<vmem>>) attributes {dimension_semantics = [#tpu.dimension_semantics<parallel>], iteration_bounds = array<i64: 1>, scalar_prefetch = 0 : i64, scratch_operands = 0 : i64, tpu.core_type = #tpu.core_type<tc>, window_params = [{transform_indices = @transform_0, window_bounds = array<i64: 1, 8, 256>}, {pipeline_mode = #tpu.pipeline_mode<synchronous>, transform_indices = @transform_1, window_bounds = array<i64: 2, 256>}, {pipeline_mode = #tpu.pipeline_mode<synchronous>, transform_indices = @transform_2, window_bounds = array<i64: 8, 9>}, {pipeline_mode = #tpu.pipeline_mode<synchronous>, transform_indices = @transform_3, window_bounds = array<i64: 8, 1>}, {pipeline_mode = #tpu.pipeline_mode<synchronous>, transform_indices = @transform_4, window_bounds = array<i64: 16, 8>}, {pipeline_mode = #tpu.pipeline_mode<synchronous>, transform_indices = @transform_5, window_bounds = array<i64: 16, 1>}, {transform_indices = @transform_6, window_bounds = array<i64: 1, 16, 256>}]} {
    %c0 = arith.constant 0 : index
    %c0_0 = arith.constant 0 : index
    %c0_1 = arith.constant 0 : index
    %0 = vector.load %arg1[%c0, %c0_0, %c0_1] : memref<1x8x256xf32, #tpu.memory_space<vmem>>, vector<1x8x256xf32>
    %1 = vector.shape_cast %0 : vector<1x8x256xf32> to vector<8x256xf32>
    %c0_2 = arith.constant 0 : index
    %c0_3 = arith.constant 0 : index
    %2 = vector.load %arg3[%c0_2, %c0_3] : memref<8x9xf32, #tpu.memory_space<vmem>>, vector<8x9xf32>
    %c0_4 = arith.constant 0 : index
    %c0_5 = arith.constant 0 : index
    %3 = vector.load %arg2[%c0_4, %c0_5] : memref<2x256xi32, #tpu.memory_space<vmem>>, vector<1x256xi32>
    %c1 = arith.constant 1 : index
    %c0_6 = arith.constant 0 : index
    %4 = vector.load %arg2[%c1, %c0_6] : memref<2x256xi32, #tpu.memory_space<vmem>>, vector<1x256xi32>
    %c1_i32 = arith.constant 1 : i32
    %5 = vector.broadcast %c1_i32 : i32 to vector<1x256xi32>
    %6 = arith.cmpi sge, %3, %5 : vector<1x256xi32>
    %c15_i32 = arith.constant 15 : i32
    %7 = vector.broadcast %c15_i32 : i32 to vector<1x256xi32>
    %8 = arith.cmpi slt, %3, %7 : vector<1x256xi32>
    %c1_i32_7 = arith.constant 1 : i32
    %9 = vector.broadcast %c1_i32_7 : i32 to vector<1x256xi32>
    %10 = arith.cmpi sge, %4, %9 : vector<1x256xi32>
    %c15_i32_8 = arith.constant 15 : i32
    %11 = vector.broadcast %c15_i32_8 : i32 to vector<1x256xi32>
    %12 = arith.cmpi slt, %4, %11 : vector<1x256xi32>
    %13 = vector.extract_strided_slice %2 {offsets = [0, 4], sizes = [8, 1], strides = [1, 1]} : vector<8x9xf32> to vector<8x1xf32>
    %14 = vector.broadcast %13 : vector<8x1xf32> to vector<8x256xf32>
    %15 = arith.mulf %14, %1 : vector<8x256xf32>
    %c17_i32 = arith.constant 17 : i32
    %16 = tpu.dynamic_rotate %1 by %c17_i32 dim 1 : vector<8x256xf32>, i32 -> vector<8x256xf32>
    %17 = arith.andi %6, %10 : vector<1x256xi1>
    %18 = vector.extract_strided_slice %2 {offsets = [0, 0], sizes = [8, 1], strides = [1, 1]} : vector<8x9xf32> to vector<8x1xf32>
    %cst = arith.constant 0.000000e+00 : f32
    %19 = vector.shape_cast %17 : vector<1x256xi1> to vector<1x256xi1>
    %20 = vector.broadcast %19 : vector<1x256xi1> to vector<8x256xi1>
    %21 = vector.broadcast %cst : f32 to vector<8x256xf32>
    %22 = arith.select %20, %16, %21 : vector<8x256xi1>, vector<8x256xf32>
    %23 = vector.broadcast %18 : vector<8x1xf32> to vector<8x256xf32>
    %24 = arith.mulf %23, %22 : vector<8x256xf32>
    %25 = arith.addf %15, %24 : vector<8x256xf32>
    %c16_i32 = arith.constant 16 : i32
    %26 = tpu.dynamic_rotate %1 by %c16_i32 dim 1 : vector<8x256xf32>, i32 -> vector<8x256xf32>
    %27 = vector.extract_strided_slice %2 {offsets = [0, 1], sizes = [8, 1], strides = [1, 1]} : vector<8x9xf32> to vector<8x1xf32>
    %cst_9 = arith.constant 0.000000e+00 : f32
    %28 = vector.shape_cast %6 : vector<1x256xi1> to vector<1x256xi1>
    %29 = vector.broadcast %28 : vector<1x256xi1> to vector<8x256xi1>
    %30 = vector.broadcast %cst_9 : f32 to vector<8x256xf32>
    %31 = arith.select %29, %26, %30 : vector<8x256xi1>, vector<8x256xf32>
    %32 = vector.broadcast %27 : vector<8x1xf32> to vector<8x256xf32>
    %33 = arith.mulf %32, %31 : vector<8x256xf32>
    %34 = arith.addf %25, %33 : vector<8x256xf32>
    %c15_i32_10 = arith.constant 15 : i32
    %35 = tpu.dynamic_rotate %1 by %c15_i32_10 dim 1 : vector<8x256xf32>, i32 -> vector<8x256xf32>
    %36 = arith.andi %6, %12 : vector<1x256xi1>
    %37 = vector.extract_strided_slice %2 {offsets = [0, 2], sizes = [8, 1], strides = [1, 1]} : vector<8x9xf32> to vector<8x1xf32>
    %cst_11 = arith.constant 0.000000e+00 : f32
    %38 = vector.shape_cast %36 : vector<1x256xi1> to vector<1x256xi1>
    %39 = vector.broadcast %38 : vector<1x256xi1> to vector<8x256xi1>
    %40 = vector.broadcast %cst_11 : f32 to vector<8x256xf32>
    %41 = arith.select %39, %35, %40 : vector<8x256xi1>, vector<8x256xf32>
    %42 = vector.broadcast %37 : vector<8x1xf32> to vector<8x256xf32>
    %43 = arith.mulf %42, %41 : vector<8x256xf32>
    %44 = arith.addf %34, %43 : vector<8x256xf32>
    %c1_i32_12 = arith.constant 1 : i32
    %45 = tpu.dynamic_rotate %1 by %c1_i32_12 dim 1 : vector<8x256xf32>, i32 -> vector<8x256xf32>
    %46 = vector.extract_strided_slice %2 {offsets = [0, 3], sizes = [8, 1], strides = [1, 1]} : vector<8x9xf32> to vector<8x1xf32>
    %cst_13 = arith.constant 0.000000e+00 : f32
    %47 = vector.shape_cast %10 : vector<1x256xi1> to vector<1x256xi1>
    %48 = vector.broadcast %47 : vector<1x256xi1> to vector<8x256xi1>
    %49 = vector.broadcast %cst_13 : f32 to vector<8x256xf32>
    %50 = arith.select %48, %45, %49 : vector<8x256xi1>, vector<8x256xf32>
    %51 = vector.broadcast %46 : vector<8x1xf32> to vector<8x256xf32>
    %52 = arith.mulf %51, %50 : vector<8x256xf32>
    %53 = arith.addf %44, %52 : vector<8x256xf32>
    %c255_i32 = arith.constant 255 : i32
    %54 = tpu.dynamic_rotate %1 by %c255_i32 dim 1 : vector<8x256xf32>, i32 -> vector<8x256xf32>
    %55 = vector.extract_strided_slice %2 {offsets = [0, 5], sizes = [8, 1], strides = [1, 1]} : vector<8x9xf32> to vector<8x1xf32>
    %cst_14 = arith.constant 0.000000e+00 : f32
    %56 = vector.shape_cast %12 : vector<1x256xi1> to vector<1x256xi1>
    %57 = vector.broadcast %56 : vector<1x256xi1> to vector<8x256xi1>
    %58 = vector.broadcast %cst_14 : f32 to vector<8x256xf32>
    %59 = arith.select %57, %54, %58 : vector<8x256xi1>, vector<8x256xf32>
    %60 = vector.broadcast %55 : vector<8x1xf32> to vector<8x256xf32>
    %61 = arith.mulf %60, %59 : vector<8x256xf32>
    %62 = arith.addf %53, %61 : vector<8x256xf32>
    %c241_i32 = arith.constant 241 : i32
    %63 = tpu.dynamic_rotate %1 by %c241_i32 dim 1 : vector<8x256xf32>, i32 -> vector<8x256xf32>
    %64 = arith.andi %8, %10 : vector<1x256xi1>
    %65 = vector.extract_strided_slice %2 {offsets = [0, 6], sizes = [8, 1], strides = [1, 1]} : vector<8x9xf32> to vector<8x1xf32>
    %cst_15 = arith.constant 0.000000e+00 : f32
    %66 = vector.shape_cast %64 : vector<1x256xi1> to vector<1x256xi1>
    %67 = vector.broadcast %66 : vector<1x256xi1> to vector<8x256xi1>
    %68 = vector.broadcast %cst_15 : f32 to vector<8x256xf32>
    %69 = arith.select %67, %63, %68 : vector<8x256xi1>, vector<8x256xf32>
    %70 = vector.broadcast %65 : vector<8x1xf32> to vector<8x256xf32>
    %71 = arith.mulf %70, %69 : vector<8x256xf32>
    %72 = arith.addf %62, %71 : vector<8x256xf32>
    %c240_i32 = arith.constant 240 : i32
    %73 = tpu.dynamic_rotate %1 by %c240_i32 dim 1 : vector<8x256xf32>, i32 -> vector<8x256xf32>
    %74 = vector.extract_strided_slice %2 {offsets = [0, 7], sizes = [8, 1], strides = [1, 1]} : vector<8x9xf32> to vector<8x1xf32>
    %cst_16 = arith.constant 0.000000e+00 : f32
    %75 = vector.shape_cast %8 : vector<1x256xi1> to vector<1x256xi1>
    %76 = vector.broadcast %75 : vector<1x256xi1> to vector<8x256xi1>
    %77 = vector.broadcast %cst_16 : f32 to vector<8x256xf32>
    %78 = arith.select %76, %73, %77 : vector<8x256xi1>, vector<8x256xf32>
    %79 = vector.broadcast %74 : vector<8x1xf32> to vector<8x256xf32>
    %80 = arith.mulf %79, %78 : vector<8x256xf32>
    %81 = arith.addf %72, %80 : vector<8x256xf32>
    %c239_i32 = arith.constant 239 : i32
    %82 = tpu.dynamic_rotate %1 by %c239_i32 dim 1 : vector<8x256xf32>, i32 -> vector<8x256xf32>
    %83 = arith.andi %8, %12 : vector<1x256xi1>
    %84 = vector.extract_strided_slice %2 {offsets = [0, 8], sizes = [8, 1], strides = [1, 1]} : vector<8x9xf32> to vector<8x1xf32>
    %cst_17 = arith.constant 0.000000e+00 : f32
    %85 = vector.shape_cast %83 : vector<1x256xi1> to vector<1x256xi1>
    %86 = vector.broadcast %85 : vector<1x256xi1> to vector<8x256xi1>
    %87 = vector.broadcast %cst_17 : f32 to vector<8x256xf32>
    %88 = arith.select %86, %82, %87 : vector<8x256xi1>, vector<8x256xf32>
    %89 = vector.broadcast %84 : vector<8x1xf32> to vector<8x256xf32>
    %90 = arith.mulf %89, %88 : vector<8x256xf32>
    %91 = arith.addf %81, %90 : vector<8x256xf32>
    %c0_18 = arith.constant 0 : index
    %c0_19 = arith.constant 0 : index
    %92 = vector.load %arg4[%c0_18, %c0_19] : memref<8x1xf32, #tpu.memory_space<vmem>>, vector<8x1xf32>
    %93 = vector.broadcast %92 : vector<8x1xf32> to vector<8x256xf32>
    %94 = arith.addf %91, %93 : vector<8x256xf32>
    %cst_20 = arith.constant 0.000000e+00 : f32
    %95 = vector.broadcast %cst_20 : f32 to vector<8x256xf32>
    %96 = arith.maximumf %94, %95 : vector<8x256xf32>
    %c0_21 = arith.constant 0 : index
    %c0_22 = arith.constant 0 : index
    %97 = vector.load %arg5[%c0_21, %c0_22] : memref<16x8xf32, #tpu.memory_space<vmem>>, vector<16x8xf32>
    %cst_23 = arith.constant dense<0.000000e+00> : vector<16x256xf32>
    %98 = tpu.matmul %97, %96, %cst_23 {dimension_numbers = #tpu.dot_dimension_numbers<[1], [0], [0], [1], [0, 0, 1, 1], [], []>} : vector<16x8xf32>, vector<8x256xf32>, vector<16x256xf32> -> vector<16x256xf32>
    %c0_24 = arith.constant 0 : index
    %c0_25 = arith.constant 0 : index
    %99 = vector.load %arg6[%c0_24, %c0_25] : memref<16x1xf32, #tpu.memory_space<vmem>>, vector<16x1xf32>
    %100 = vector.broadcast %99 : vector<16x1xf32> to vector<16x256xf32>
    %101 = arith.addf %98, %100 : vector<16x256xf32>
    %cst_26 = arith.constant 0.000000e+00 : f32
    %102 = vector.broadcast %cst_26 : f32 to vector<16x256xf32>
    %103 = arith.maximumf %101, %102 : vector<16x256xf32>
    %c0_27 = arith.constant 0 : index
    %c0_28 = arith.constant 0 : index
    %c0_29 = arith.constant 0 : index
    %104 = vector.load %arg7[%c0_27, %c0_28, %c0_29] : memref<1x16x256xf32, #tpu.memory_space<vmem>>, vector<1x16x256xf32>
    %105 = vector.shape_cast %104 : vector<1x16x256xf32> to vector<16x256xf32>
    %106 = vector.shape_cast %103 : vector<16x256xf32> to vector<1x16x256xf32>
    tpu.vector_store %arg7[%c0_27, %c0_28, %c0_29], %106 {strides = array<i32>} : memref<1x16x256xf32, #tpu.memory_space<vmem>>, vector<1x16x256xf32>,
    return
  }
  func.func @transform_0(%arg0: i32) -> (i32, i32, i32) {
    %c0_i32 = arith.constant 0 : i32
    %c0_i32_0 = arith.constant 0 : i32
    %c0_i32_1 = arith.constant 0 : i32
    return %arg0, %c0_i32, %c0_i32_0 : i32, i32, i32
  }
  func.func @transform_1(%arg0: i32) -> (i32, i32) {
    %c0_i32 = arith.constant 0 : i32
    %c0_i32_0 = arith.constant 0 : i32
    %c0_i32_1 = arith.constant 0 : i32
    return %c0_i32, %c0_i32_0 : i32, i32
  }
  func.func @transform_2(%arg0: i32) -> (i32, i32) {
    %c0_i32 = arith.constant 0 : i32
    %c0_i32_0 = arith.constant 0 : i32
    %c0_i32_1 = arith.constant 0 : i32
    return %c0_i32, %c0_i32_0 : i32, i32
  }
  func.func @transform_3(%arg0: i32) -> (i32, i32) {
    %c0_i32 = arith.constant 0 : i32
    %c0_i32_0 = arith.constant 0 : i32
    %c0_i32_1 = arith.constant 0 : i32
    return %c0_i32, %c0_i32_0 : i32, i32
  }
  func.func @transform_4(%arg0: i32) -> (i32, i32) {
    %c0_i32 = arith.constant 0 : i32
    %c0_i32_0 = arith.constant 0 : i32
    %c0_i32_1 = arith.constant 0 : i32
    return %c0_i32, %c0_i32_0 : i32, i32
  }
  func.func @transform_5(%arg0: i32) -> (i32, i32) {
    %c0_i32 = arith.constant 0 : i32
    %c0_i32_0 = arith.constant 0 : i32
    %c0_i32_1 = arith.constant 0 : i32
    return %c0_i32, %c0_i32_0 : i32, i32
  }
  func.func @transform_6(%arg0: i32) -> (i32, i32, i32) {
    %c0_i32 = arith.constant 0 : i32
    %c0_i32_0 = arith.constant 0 : i32
    %c0_i32_1 = arith.constant 0 : i32
    return %arg0, %c0_i32, %c0_i32_0 : i32, i32, i32
  }
}

</mosaic_0001>

<bundles_post_ra>
// kernel: tpu_custom_call.1
= control target key start
LH: loop header
LB: loop body
LE: loop exit
PB: predicated region body
PF: predicated region fallthrough
CT: control target
= control target key end

     0   :  { %v390_v2 = vmov 4   ;;  %s391_s25 = smov 17   ;;  %v392_v3 = vmov 1   ;;  %s706_s0 = inlined_call_operand.vmem [shape: f32[1,8,256], index: 0, kind: input, shape index: {}]   ;;  %s707_s1 = inlined_call_operand.vmem [shape: s32[2,256], index: 1, kind: input, shape index: {}]   ;;  %s708_s2 = inlined_call_operand.vmem [shape: f32[8,9], index: 2, kind: input, shape index: {}]   ;;  %s709_s3 = inlined_call_operand.vmem [shape: f32[8,1], index: 3, kind: input, shape index: {}]   ;;  %s710_s4 = inlined_call_operand.vmem [shape: f32[16,8], index: 4, kind: input, shape index: {}]   ;;  %s711_s5 = inlined_call_operand.vmem [shape: f32[16,1], index: 5, kind: input, shape index: {}]   ;;  %s712_s6 = inlined_call_operand.hbm [shape: f32[1,16,256], index: 6, kind: output, shape index: {}]  }
   0x1   :  { %v447_v0 = vld [vmem:[%s706_s0] sm:$0xff]  ;;  %352 = vset.pattern.permute.xlu1 %v390_v2  ;;  %354 = vset.pattern.permute.xlu0 %v392_v3 }
   0x2   :  { %v26_v1 = vld [vmem:[%s708_s2] sm:$0xff]  ;;  %41 = vrot.lane.b32.xlu0 %v447_v0, %s391_s25 }
   0x3   :  { %36 = vperm.xlu1 %352, %v26_v1  }
   0x4   :  { %11 = vsyncpa [#allocation3], 0  ;;  %s393_s26 = smov 16   ;;  %v394_v4 = vmov 0   ;;  %v459_v5 = vld [vmem:[%s706_s0 + $0x8] sm:$0xff]  ;;  %s395_s2 = smov 15   ;;  %v45_v27 = vlaneseq }
   0x5   :  { %66 = vrot.lane.b32.xlu2 %v447_v0, %s393_s26  ;;  %v396_v6 = vmov 2   ;;  %s397_s29 = smov 1   ;;  %s398_s0 = smov 127   ;;  %v399_v7 = vmov 3   ;;  %v401_v8 = vmov 5   ;;  %v403_v9 = vmov 6  }
   0x6   :  { %361 = vset.pattern.permute.xlu2 %v394_v4  ;;  %s400_s30 = smov 113   ;;  %s402_s7 = smov 112   ;;  %v405_v10 = vmov 7   ;;  %v223_v11 = vld [vmem:[%s709_s3] sm:$0xff]  ;;  %v406_v12 = vmov 8   ;;  %v517_v31 = vand.u32 127, %v45_v27 }
   0x7   :  { %s404_s8 = smov 111   ;;  %v499_v25 = vld [vmem:[%s707_s1] ss:$2 sm:$0x3]  ;;  %s407_s20 = smov [#allocation2]  }
   0x8   :  { %v504_v26 = vld [vmem:[%s707_s1 + $0x1] ss:$2 sm:$0x3]  ;;  %vm30_vm0 = vcmp.ge.s32.totalorder %v499_v25, 1  ;;  %vm47_vm5 = vcmp.lt.s32.totalorder %v517_v31, 17  ;;  %vm70_vm6 = vcmp.lt.s32.totalorder %v517_v31, 16 }
   0x9   :  { %vm32_vm1 = vcmp.ge.s32.totalorder %v504_v26, 1  ;;  %vm33_vm3 = vcmp.lt.s32.totalorder %v504_v26, 15  ;;  %v73_v33 = vsel %vm30_vm0, 1, %v394_v4  ;;  %vm31_vm11 = vcmp.lt.s32.totalorder %v499_v25, 15  ;;  %s312_s21 = sshll.u32 %s407_s20, 4  ;;  %s314_s23 = sshll.u32 %s712_s6, 4  ;;  %s313_s21 = int_to_ptr.vmem [resolvable:$true] %s312_s21  ;;  %s315_s23 = int_to_ptr.hbm [resolvable:$true] %s314_s23 }
   0xa   :  { %43 = vrot.lane.b32.xlu0 %v459_v5, %s391_s25  ;;  %vm50_vm2 = vmand %vm30_vm0, %vm32_vm1  ;;  %v74_v36 = vperm.slane %v73_v33, 0  ;;  %v75_v37 = vperm.slane %v73_v33, 1  ;;  %v118_v42 = vsel %vm32_vm1, 1, %v394_v4  ;;  %v140_v51 = vsel %vm33_vm3, 1, %v394_v4  ;;  %s408_s24 = smov 256  }
   0xb   :  { %353 = vset.pattern.permute.xlu1 %v394_v4  ;;  %v51_v32 = vsel %vm50_vm2, 1, %v394_v4  ;;  %vm95_vm4 = vmand %vm30_vm0, %vm33_vm3  ;;  %v119_v55 = vperm.slane %v118_v42, 0  ;;  %v120_v56 = vperm.slane %v118_v42, 1  ;;  %vm92_vm12 = vcmp.lt.s32.totalorder %v517_v31, 15 }
   0xc   :  { %59 = vperm.xlu1 %353, %v26_v1   ;;  %v52_v34 = vperm.slane %v51_v32, 0  ;;  %v53_v35 = vperm.slane %v51_v32, 1  ;;  %v96_v38 = vsel %vm95_vm4, 1, %v394_v4  ;;  %vm539_vm9 = vcmp.eq.s32.totalorder %v74_v36, 1  ;;  %vm162_vm15 = vmand %vm31_vm11, %vm32_vm1 }
   0xd   :  { %68 = vrot.lane.b32.xlu2 %v459_v5, %s393_s26  ;;  %v97_v46 = vperm.slane %v96_v38, 0  ;;  %v98_v47 = vperm.slane %v96_v38, 1  ;;  %vm547_vm10 = vcmp.eq.s32.totalorder %v75_v37, 1  ;;  %v141_v60 = vperm.slane %v140_v51, 0 }
   0xe   :  { %vm526_vm7 = vcmp.eq.s32.totalorder %v52_v34, 1  ;;  %vm530_vm8 = vcmp.eq.s32.totalorder %v53_v35, 1  ;;  %vm115_vm0 = vcmp.lt.s32.totalorder %v517_v31, 1  ;;  %vm581_vm2 = vcmp.eq.s32.totalorder %v119_v55, 1 }
   0xf   :  { %vm564_vm13 = vcmp.eq.s32.totalorder %v97_v46, 1  ;;  %vm568_vm14 = vcmp.eq.s32.totalorder %v98_v47, 1  ;;  %vm585_vm4 = vcmp.eq.s32.totalorder %v120_v56, 1  ;;  %vm137_vm1 = vcmp.lt.s32.totalorder %v517_v31, 127 }
  0x12   :  { %81 = vperm.xlu0 %354, %v26_v1  }
  0x14   :  { %88 = vrot.lane.b32.xlu1 %v447_v0, %s395_s2 }
  0x15   :  { %90 = vrot.lane.b32.xlu2 %v459_v5, %s395_s2  ;;  %355 = vset.pattern.permute.xlu1 %v396_v6 }
  0x1a   :  { %113 = vrot.lane.b32.xlu0 %v459_v5, %s397_s29 }
  0x1b   :  { %362 = vset.pattern.permute.xlu0 %v394_v4 }
  0x1c   :  { %104 = vperm.xlu1 %355, %v26_v1  }
  0x1d   :  { %111 = vrot.lane.b32.xlu2 %v447_v0, %s397_s29 }
  0x22   :  { %135 = vrot.lane.b32.xlu0 %v459_v5, %s398_s0 }
  0x24   :  { %356 = vset.pattern.permute.xlu1 %v399_v7 }
  0x25   :  { %133 = vrot.lane.b32.xlu2 %v447_v0, %s398_s0  ;;  %126 = vperm.xlu1 %356, %v26_v1  }
  0x2a   :  { %157 = vrot.lane.b32.xlu0 %v459_v5, %s400_s30 }
  0x2d   :  { %155 = vrot.lane.b32.xlu2 %v447_v0, %s400_s30  ;;  %357 = vset.pattern.permute.xlu1 %v401_v8 }
  0x2e   :  { %148 = vperm.xlu1 %357, %v26_v1  }
  0x32   :  { %180 = vrot.lane.b32.xlu0 %v459_v5, %s402_s7 }
  0x35   :  { %178 = vrot.lane.b32.xlu2 %v447_v0, %s402_s7 }
  0x36   :  { %358 = vset.pattern.permute.xlu1 %v403_v9  ;;  %v163_v9 = vsel %vm162_vm15, 1, %v394_v4 }
  0x37   :  { %171 = vperm.xlu1 %358, %v26_v1   ;;  %v164_v32 = vperm.slane %v163_v9, 0  ;;  %v165_v33 = vperm.slane %v163_v9, 1 }
  0x3a   :  { %202 = vrot.lane.b32.xlu0 %v459_v5, %s404_s8 }
  0x3d   :  { %200 = vrot.lane.b32.xlu2 %v447_v0, %s404_s8 }
  0x3f   :  { %359 = vset.pattern.permute.xlu1 %v405_v10  ;;  %v236_v10 = vld [vmem:[%s711_s5 + $0x8] sm:$0xff] }
  0x40   :  { %193 = vperm.xlu1 %359, %v26_v1  }
  0x45   :  { %226 = vperm.xlu2 %361, %v223_v11   ;;  %v235_v11 = vld [vmem:[%s711_s5] sm:$0xff] }
  0x46   :  { %239 = vperm.xlu0 %362, %v235_v11  }
  0x48   :  { %360 = vset.pattern.permute.xlu1 %v406_v12 }
  0x49   :  { %216 = vperm.xlu1 %360, %v26_v1   ;;  %v142_v1 = vperm.slane %v140_v51, 1 }
  0x51   :  { %363 = vset.pattern.permute.xlu1 %v394_v4 }
  0x52   :  { %244 = vperm.xlu1 %363, %v236_v10  }
  0x5f   :  { %v67_v13 = vpop.permute.xlu2 %66 }
  0x67   :  { %v69_v16 = vpop.permute.xlu2 %68 }
  0x68   :  { %v71_v49 = vsel %vm70_vm6, %v67_v13, %v69_v16  ;;  %v72_v54 = vsel %vm70_vm6, %v69_v16, %v67_v13  ;;  %vm618_vm6 = vcmp.eq.s32.totalorder %v142_v1, 1 }
  0x69   :  { %v78_v62 = vsel %vm539_vm9, %v72_v54, 0.0  ;;  %v79_v63 = vsel %vm547_vm10, %v71_v49, 0.0  ;;  %vm657_vm9 = vcmp.eq.s32.totalorder %v165_v33, 1  ;;  %vm182_vm10 = vcmp.lt.s32.totalorder %v517_v31, 112 }
  0x6f   :  { %v484_v19 = vpop.permute.xlu2 %90 }
  0x74   :  { %v42_v14 = vpop.permute.xlu0 %41 }
  0x75   :  { %v482_v15 = vpop.permute.xlu1 %36 }
  0x76   :  { %v39_v7 = vmul.f32 %v482_v15, %v447_v0  ;;  %v40_v8 = vmul.f32 %v482_v15, %v459_v5  ;;  %v185_v5 = vsel %vm31_vm11, 1, %v394_v4 }
  0x77   :  { %v490_v22 = vpop.permute.xlu2 %111  ;;  %v186_v35 = vperm.slane %v185_v5, 0  ;;  %v187_v36 = vperm.slane %v185_v5, 1 }
  0x7c   :  { %v44_v17 = vpop.permute.xlu0 %43 }
  0x7d   :  { %v49_v39 = vsel %vm47_vm5, %v44_v17, %v42_v14  ;;  %v48_v44 = vsel %vm47_vm5, %v42_v14, %v44_v17  ;;  %vm603_vm5 = vcmp.eq.s32.totalorder %v141_v60, 1 }
  0x7e   :  { %v60_v18 = vpop.permute.xlu1 %59  ;;  %v56_v53 = vsel %vm526_vm7, %v49_v39, 0.0  ;;  %v57_v57 = vsel %vm530_vm8, %v48_v44, 0.0  ;;  %vm159_vm7 = vcmp.lt.s32.totalorder %v517_v31, 113  ;;  %vm207_vm8 = vmand %vm31_vm11, %vm33_vm3  ;;  %vm653_vm3 = vcmp.eq.s32.totalorder %v164_v32, 1 }
  0x7f   :  { %v510_v28 = vpop.permute.xlu2 %133  ;;  %v62_v61 = vmul.f32 %v60_v18, %v56_v53  ;;  %v63_v2 = vmul.f32 %v60_v18, %v57_v57  ;;  %vm662_vm11 = vcmp.eq.s32.totalorder %v186_v35, 1  ;;  %v234_v35 = vld [vmem:[%s710_s4 + $0x8] sm:$0xff] }
  0x81   :  { %v64_v14 = vadd.f32 %v62_v61, %v39_v7  ;;  %v65_v27 = vadd.f32 %v63_v2, %v40_v8 }
  0x84   :  { %v486_v20 = vpop.permute.xlu0 %81 }
  0x85   :  { %v84_v12 = vmul.f32 %v486_v20, %v78_v62  ;;  %v85_v13 = vmul.f32 %v486_v20, %v79_v63 }
  0x86   :  { %v488_v21 = vpop.permute.xlu1 %88 }
  0x87   :  { %v537_v43 = vpop.permute.xlu2 %155  ;;  %v93_v15 = vsel %vm92_vm12, %v488_v21, %v484_v19  ;;  %v94_v16 = vsel %vm92_vm12, %v484_v19, %v488_v21  ;;  %v86_v37 = vadd.f32 %v84_v12, %v64_v14  ;;  %v87_v38 = vadd.f32 %v85_v13, %v65_v27 }
  0x88   :  { %v101_v39 = vsel %vm564_vm13, %v94_v16, 0.0  ;;  %v102_v40 = vsel %vm568_vm14, %v93_v15, 0.0  ;;  %vm666_vm12 = vcmp.eq.s32.totalorder %v187_v36, 1  ;;  %vm204_vm13 = vcmp.lt.s32.totalorder %v517_v31, 111  ;;  %v233_v36 = vld [vmem:[%s710_s4] sm:$0xff] }
  0x8c   :  { %v492_v23 = vpop.permute.xlu0 %113 }
  0x8d   :  { %v116_v34 = vsel %vm115_vm0, %v490_v22, %v492_v23  ;;  %v117_v19 = vsel %vm115_vm0, %v492_v23, %v490_v22  ;;  %vm247_vm0 = vcmask 64512  }
  0x8e   :  { %v494_v24 = vpop.permute.xlu1 %104  ;;  %v123_v26 = vsel %vm581_vm2, %v117_v19, 0.0  ;;  %v124_v25 = vsel %vm585_vm4, %v116_v34, 0.0 }
  0x8f   :  { %v179_v20 = vpop.permute.xlu2 %178  ;;  %v107_v41 = vmul.f32 %v494_v24, %v101_v39  ;;  %v108_v22 = vmul.f32 %v494_v24, %v102_v40 }
  0x91   :  { %v109_v51 = vadd.f32 %v107_v41, %v86_v37  ;;  %v110_v53 = vadd.f32 %v108_v22, %v87_v38 }
  0x94   :  { %v515_v30 = vpop.permute.xlu0 %135 }
  0x95   :  { %v138_v23 = vsel %vm137_vm1, %v510_v28, %v515_v30  ;;  %v139_v42 = vsel %vm137_vm1, %v515_v30, %v510_v28  ;;  %v208_v30 = vsel %vm207_vm8, 1, %v394_v4 }
  0x96   :  { %v145_v46 = vsel %vm603_vm5, %v138_v23, 0.0  ;;  %v146_v47 = vsel %vm618_vm6, %v139_v42, 0.0  ;;  %v209_v58 = vperm.slane %v208_v30, 0  ;;  %v210_v59 = vperm.slane %v208_v30, 1 }
  0x97   :  { %v513_v29 = vpop.permute.xlu1 %126 }
  0x98   :  { %v129_v4 = vmul.f32 %v513_v29, %v123_v26  ;;  %v130_v54 = vmul.f32 %v513_v29, %v124_v25  ;;  %vm211_vm14 = vcmp.eq.s32.totalorder %v209_v58, 1  ;;  %vm212_vm15 = vcmp.eq.s32.totalorder %v210_v59, 1 }
  0x9a   :  { %v131_v63 = vadd.f32 %v129_v4, %v109_v51  ;;  %v132_v29 = vadd.f32 %v130_v54, %v110_v53 }
  0x9c   :  { %v554_v52 = vpop.permute.xlu0 %157 }
  0x9d   :  { %v160_v49 = vsel %vm159_vm7, %v537_v43, %v554_v52  ;;  %v161_v50 = vsel %vm159_vm7, %v554_v52, %v537_v43  ;;  %v201_v52 = vpop.permute.xlu2 %200 }
  0x9e   :  { %v168_v62 = vsel %vm653_vm3, %v160_v49, 0.0  ;;  %v169_v43 = vsel %vm657_vm9, %v161_v50, 0.0 }
  0xa0   :  { %v543_v48 = vpop.permute.xlu1 %148 }
  0xa1   :  { %v151_v60 = vmul.f32 %v543_v48, %v145_v46  ;;  %v152_v61 = vmul.f32 %v543_v48, %v146_v47 }
  0xa3   :  { %v153_v7 = vadd.f32 %v151_v60, %v131_v63  ;;  %v154_v8 = vadd.f32 %v152_v61, %v132_v29 }
  0xa4   :  { %v181_v21 = vpop.permute.xlu0 %180 }
  0xa5   :  { %v183_v55 = vsel %vm182_vm10, %v179_v20, %v181_v21  ;;  %v184_v56 = vsel %vm182_vm10, %v181_v21, %v179_v20  ;;  %v227_v27 = vpop.permute.xlu2 %226 }
  0xa6   :  { %v190_v1 = vsel %vm662_vm11, %v183_v55, 0.0  ;;  %v191_v2 = vsel %vm666_vm12, %v184_v56, 0.0 }
  0xa9   :  { %v172_v18 = vpop.permute.xlu1 %171 }
  0xaa   :  { %v174_v6 = vmul.f32 %v172_v18, %v168_v62  ;;  %v175_v48 = vmul.f32 %v172_v18, %v169_v43 }
  0xac   :  { %v203_v3 = vpop.permute.xlu0 %202  ;;  %v176_v31 = vadd.f32 %v174_v6, %v153_v7  ;;  %v177_v13 = vadd.f32 %v175_v48, %v154_v8 }
  0xad   :  { %v205_v11 = vsel %vm204_vm13, %v201_v52, %v203_v3  ;;  %v206_v12 = vsel %vm204_vm13, %v203_v3, %v201_v52 }
  0xae   :  { %v213_v5 = vsel %vm211_vm14, %v205_v11, 0.0  ;;  %v214_v14 = vsel %vm212_vm15, %v206_v12, 0.0 }
  0xb2   :  { %v194_v57 = vpop.permute.xlu1 %193 }
  0xb3   :  { %v196_v9 = vmul.f32 %v194_v57, %v190_v1  ;;  %v197_v10 = vmul.f32 %v194_v57, %v191_v2 }
  0xb5   :  { %v198_v15 = vadd.f32 %v196_v9, %v176_v31  ;;  %v199_v16 = vadd.f32 %v197_v10, %v177_v13 }
  0xb8   :  { %v240_v37 = vpop.permute.xlu0 %239 }
  0xbb   :  { %v217_v0 = vpop.permute.xlu1 %216 }
  0xbc   :  { %v219_v17 = vmul.f32 %v217_v0, %v213_v5  ;;  %v220_v20 = vmul.f32 %v217_v0, %v214_v14 }
  0xbe   :  { %v221_v32 = vadd.f32 %v219_v17, %v198_v15  ;;  %v222_v18 = vadd.f32 %v220_v20, %v199_v16 }
  0xc0   :  { %v229_v33 = vadd.f32 %v227_v27, %v221_v32  ;;  %v230_v34 = vadd.f32 %v227_v27, %v222_v18 }
  0xc2   :  { %v231_v19 = vmax.f32 %v229_v33, 0.0  ;;  %v232_v21 = vmax.f32 %v230_v34, 0.0 }
  0xc4   :  { %269 = vmatpush.msra.mxu0 %v231_v19  ;;  %331 = vmatpush.msra.mxu2 %v231_v19  ;;  %v245_v22 = vpop.permute.xlu1 %244 }
  0xc5   :  { %292 = vmatpush.msra.mxu1 %v232_v21  ;;  %332 = vmatpush.msra.mxu3 %v232_v21 }
  0xc6   :  { %328 = vmatmul.msk.f32.vlgmr.msra.gmra.mxu2 %vm247_vm0, %v234_v35  ;;  %330 = vmatmul.msk.f32.vlgmr.msra.gmra.mxu3 %vm247_vm0, %v234_v35 }
  0xc7   :  { %327 = vmatmul.msk.f32.vlgmr.msra.gmra.mxu0 %vm247_vm0, %v233_v36  ;;  %329 = vmatmul.msk.f32.vlgmr.msra.gmra.mxu1 %vm247_vm0, %v233_v36 }
 0x144   :  { %v294_v38 = vpop.f32.mrf.mxu1  ;;  %v271_v39 = vpop.f32.mrf.mxu0 }
 0x145   :  { %v295_v40 = vadd.f32 %v294_v38, %v240_v37  ;;  %v272_v41 = vadd.f32 %v271_v39, %v240_v37 }
 0x147   :  { %v301_v23 = vmax.f32 %v295_v40, 0.0  ;;  %v300_v42 = vmax.f32 %v272_v41, 0.0 }
 0x149   :  { %v297_v26 = vpop.f32.mrf.mxu3  ;;  %305 = vst [vmem:[#allocation2 + $0x8] sm:$0xff] %v301_v23  ;;  %v274_v25 = vpop.f32.mrf.mxu2 }
 0x14a   :  { %v298_v44 = vadd.f32 %v297_v26, %v245_v22  ;;  %304 = vst [vmem:[#allocation2] sm:$0xff] %v300_v42  ;;  %v275_v24 = vadd.f32 %v274_v25, %v245_v22 }
 0x14c   :  { %v303_v45 = vmax.f32 %v298_v44, 0.0  ;;  %v302_v28 = vmax.f32 %v275_v24, 0.0 }
 0x14e   :  { %307 = vst [vmem:[#allocation2 + $0x18] sm:$0xff] %v303_v45 }
 0x14f   :  { %306 = vst [vmem:[#allocation2 + $0x10] sm:$0xff] %v302_v28 }
 0x150   :  { %320 = dma.vmem_to_hbm [thread:$0]  %s313_s21, 512, %s315_s23, [#allocation3], %s408_s24, %s408_s24, %s393_s26  }
 0x151   :  { %388 = dma.done.wait [#allocation3], 512  }
 0x152   :  { %389 = vsyncadd [#allocation3], 4294966784 }
 0x153   :  { %325 = vsyncpa [#allocation3], 1 }

</bundles_post_ra>
